<compile_context>
chip_gen: v7x
topology: tpu7x:2x2x1
jax: 0.10.0
libtpu: 0.0.40
codegen_flags: <defaults>
</compile_context>

<pallas_src>
import jax
import jax.numpy as jnp
from jax.experimental import pallas as pl
from jax.experimental.pallas import tpu as pltpu


# ---------------------------------------------------------------------------
# Backward Pallas kernel: out = neg_alpha * g   (neg_alpha already = -alpha)
# ---------------------------------------------------------------------------
def _neg_scale_kernel(neg_alpha_ref, g_ref, o_ref):
    # neg_alpha lives in SMEM as a (1,) float32; multiply in f32, cast once.
    o_ref[...] = (neg_alpha_ref[0] * g_ref[...]).astype(o_ref.dtype)


# ~2 MiB per block => <= 8 MiB with double-buffered in+out; safely inside the
# default scoped-VMEM limit on v5e (16 MiB) and well inside v6e/v7x limits,
# while being large enough (>=512 rows for f32) to sit near the HBM roofline.
_TARGET_TILE_BYTES = 2 * 1024 * 1024

# Wider last dim => unmasked, lane-dense vst (the biggest single lever for
# memory-bound elementwise kernels).  Prefer the widest lane that divides n.
_LANE_CHOICES = (8192, 4096, 2048, 1024, 512, 256, 128)


def _pick_layout(n):
    """Lane-dense 2D view of n elements: (lane_width, rows, padded_n)."""
    for lane in _LANE_CHOICES:
        if n % lane == 0:
            return lane, n // lane, n
    # Ragged size: pad up to a whole number of 128-wide (or 1024-wide) rows.
    lane = 1024 if n >= 1024 else 128
    rows = pl.cdiv(n, lane)
    return lane, rows, rows * lane


def _pick_tile_rows(rows, lane, itemsize):
    """Row-tile that is either a multiple of 8 or the full row extent."""
    bytes_per_row = lane * itemsize
    tile_rows = (_TARGET_TILE_BYTES // bytes_per_row) // 8 * 8
    tile_rows = max(8, tile_rows)
    if tile_rows >= rows:
        return rows          # full extent: always a legal block shape
    return tile_rows         # multiple of 8: satisfies the (8, 128) rule


def _reversed_grad_pallas(g, neg_alpha):
    """Compute (-alpha) * g with a tiled, lane-dense Pallas TPU kernel."""
    orig_shape, orig_dtype = g.shape, g.dtype
    n = g.size
    if n == 0:
        return g

    lane, rows, padded_n = _pick_layout(n)
    g_flat = g.reshape(-1)
    if padded_n != n:
        # Ragged tail: pad, run, trim (op is elementwise, so this is exact).
        g_flat = jnp.pad(g_flat, (0, padded_n - n))
    g2d = g_flat.reshape(rows, lane)

    tile_rows = _pick_tile_rows(rows, lane, g2d.dtype.itemsize)
    num_blocks = pl.cdiv(rows, tile_rows)

    out2d = pl.pallas_call(
        _neg_scale_kernel,
        out_shape=jax.ShapeDtypeStruct((rows, lane), orig_dtype),
        grid=(num_blocks,),
        in_specs=[
            pl.BlockSpec(memory_space=pltpu.MemorySpace.SMEM),   # neg_alpha (1,)
            pl.BlockSpec((tile_rows, lane), lambda i: (i, 0)),   # grad tile
        ],
        out_specs=pl.BlockSpec((tile_rows, lane), lambda i: (i, 0)),
        compiler_params=pltpu.CompilerParams(
            dimension_semantics=("parallel",),   # lets v7x's 2 TCs split the grid
        ),
    )(neg_alpha, g2d)

    out_flat = out2d.reshape(-1)
    if padded_n != n:
        out_flat = out_flat[:n]
    return out_flat.reshape(orig_shape)


# ---------------------------------------------------------------------------
# custom_vjp: forward identity (free), backward = Pallas reversal kernel
# ---------------------------------------------------------------------------
@jax.custom_vjp
def _grad_rev_core(x, neg_alpha):
    # Forward is a pure identity -- no kernel, no HBM traffic.
    return x


def _grad_rev_fwd(x, neg_alpha):
    # Residual: only the (1,) f32 neg_alpha array (x itself is not needed).
    return x, neg_alpha


def _grad_rev_bwd(neg_alpha, g):
    grad_x = _reversed_grad_pallas(g, neg_alpha)
    # alpha is non-trainable (PyTorch returns None); give it a zero cotangent.
    return grad_x, jnp.zeros_like(neg_alpha)


_grad_rev_core.defvjp(_grad_rev_fwd, _grad_rev_bwd)


def gradient_reversal(x, alpha):
    # Fold the negation into the wrapper so the kernel multiplies by (-alpha).
    neg_alpha = (-jnp.asarray(alpha, dtype=jnp.float32)).reshape(1)
    return _grad_rev_core(x, neg_alpha)


class GradientReversal:
    """Mirror of the PyTorch nn.Module: holds alpha, forward is identity."""

    def __init__(self, alpha):
        self.alpha = float(alpha)

    def __call__(self, x):
        return gradient_reversal(x, self.alpha)


# ---------------------------------------------------------------------------
# Demo / smoke test
# ---------------------------------------------------------------------------
if __name__ == "__main__":
    key = jax.random.PRNGKey(0)
    # NCHW-style input, as a PyTorch conv feature map would be.
    x = jax.random.normal(key, (2, 4, 16, 16), dtype=jnp.float32)

    module = GradientReversal(alpha=0.5)

    # Forward pass (identity).
    y = jax.block_until_ready(module(x))
    assert y.shape == x.shape and y.dtype == x.dtype
    assert bool(jnp.allclose(y, x))

    # Backward pass exercises the tiled Pallas gradient-reversal kernel.
    grad_x = jax.grad(lambda inp: jnp.sum(module(inp)))(x)
    grad_x = jax.block_until_ready(grad_x)
    assert grad_x.shape == x.shape and grad_x.dtype == x.dtype
    assert bool(jnp.allclose(grad_x, -0.5 * jnp.ones_like(x)))

    # Ragged / padded path with a non-trivial upstream cotangent.
    z = jax.random.normal(jax.random.PRNGKey(1), (3, 7, 11), dtype=jnp.float32)
    ct = jax.random.normal(jax.random.PRNGKey(2), (3, 7, 11), dtype=jnp.float32)
    module2 = GradientReversal(alpha=1.25)
    _, vjp_fn = jax.vjp(lambda inp: module2(inp), z)
    (grad_z,) = vjp_fn(ct)
    grad_z = jax.block_until_ready(grad_z)
    assert bool(jnp.allclose(grad_z, -1.25 * ct, rtol=1e-6, atol=1e-6))

    print("KERNEL_OK")
</pallas_src>

<mosaic_0001>
module attributes {stable_mosaic.version = 11 : i64} {
  func.func @_neg_scale_kernel(%arg0: i32, %arg1: memref<1xf32, #tpu.memory_space<smem>>, %arg2: memref<1x2048xf32, #tpu.memory_space<vmem>>, %arg3: memref<1x2048xf32, #tpu.memory_space<vmem>>) attributes {dimension_semantics = [#tpu.dimension_semantics<parallel>], iteration_bounds = array<i64: 1>, scalar_prefetch = 0 : i64, scratch_operands = 0 : i64, tpu.core_type = #tpu.core_type<tc>, window_params = [{transform_indices = @transform_0, window_bounds = array<i64: 1>}, {transform_indices = @transform_1, window_bounds = array<i64: 1, 2048>}, {transform_indices = @transform_2, window_bounds = array<i64: 1, 2048>}]} {
    %c0 = arith.constant 0 : index
    %0 = memref.load %arg1[%c0] : memref<1xf32, #tpu.memory_space<smem>>
    %c0_0 = arith.constant 0 : index
    %c0_1 = arith.constant 0 : index
    %1 = vector.load %arg2[%c0_0, %c0_1] : memref<1x2048xf32, #tpu.memory_space<vmem>>, vector<1x2048xf32>
    %2 = vector.broadcast %0 : f32 to vector<1x2048xf32>
    %3 = arith.mulf %2, %1 : vector<1x2048xf32>
    %c0_2 = arith.constant 0 : index
    %c0_3 = arith.constant 0 : index
    %4 = vector.load %arg3[%c0_2, %c0_3] : memref<1x2048xf32, #tpu.memory_space<vmem>>, vector<1x2048xf32>
    tpu.vector_store %arg3[%c0_2, %c0_3], %3 {strides = array<i32>} : memref<1x2048xf32, #tpu.memory_space<vmem>>, vector<1x2048xf32>,
    return
  }
  func.func @transform_0(%arg0: i32) -> i32 {
    %c0_i32 = arith.constant 0 : i32
    %c0_i32_0 = arith.constant 0 : i32
    return %c0_i32 : i32
  }
  func.func @transform_1(%arg0: i32) -> (i32, i32) {
    %c0_i32 = arith.constant 0 : i32
    %c0_i32_0 = arith.constant 0 : i32
    return %arg0, %c0_i32 : i32, i32
  }
  func.func @transform_2(%arg0: i32) -> (i32, i32) {
    %c0_i32 = arith.constant 0 : i32
    %c0_i32_0 = arith.constant 0 : i32
    return %arg0, %c0_i32 : i32, i32
  }
}

</mosaic_0001>

<bundles_post_ra>
// kernel: tpu_custom_call.1
= control target key start
LH: loop header
LB: loop body
LE: loop exit
PB: predicated region body
PF: predicated region fallthrough
CT: control target
= control target key end

     0   :  { %8 = vsyncpa [#allocation4], 0  ;;  %s142_s0 = inlined_call_operand.<no memory space> [shape: f32[1], index: 0, kind: input, shape index: {}]   ;;  %s143_s1 = inlined_call_operand.hbm [shape: f32[1,2048], index: 1, kind: input, shape index: {}]   ;;  %s144_s2 = inlined_call_operand.hbm [shape: f32[1,2048], index: 2, kind: output, shape index: {}]  }
   0x1   :  { %9 = vsyncpa [#allocation5], 0  ;;  %s98_s9 = smov [#allocation3]   ;;  %s50_s13 = scalar_lea.hbm %s143_s1, 256 }
   0x2   :  { %s18_s10 = sshll.u32 %s98_s9, 4  ;;  %p51_p0 = scmp.ne.s32.totalorder %s143_s1, %s50_s13  ;;  %s19_s10 = int_to_ptr.vmem [resolvable:$true] %s18_s10 }
   0x3   :  { %p54_p1 = scmp.lt.u32.totalorder %s50_s13, %s143_s1 }
   0x5   :  { %p56_p2 = pnand %p54_p1, %p51_p0 }
   0x7   :  { %59 = shalt.err (!%p56_p2)
}
   0x8   :  { %s60_s18 = scalar_lea.vmem %s19_s10, 256  ;;  %p65_p4 = scmp.lt.s32.totalorder %s19_s10, %s19_s10 }
   0x9   :  { %p61_p3 = scmp.ne.s32.totalorder %s19_s10, %s60_s18  ;;  %p66_p5 = scmp.lt.s32.totalorder %s60_s18, %s60_s18 }
   0xb   :  { %p67_p6 = por %p66_p5, %p65_p4 }
   0xd   :  { %p68_p7 = pnand %p67_p6, %p61_p3 }
   0xf   :  { %71 = shalt.err (!%p68_p7)
}
  0x10   :  { %21 = dma.hbm_to_vmem [thread:$0]  %s143_s1, 256, %s19_s10, [#allocation4]  }
  0x11   :  { %94 = dma.done.wait [#allocation4], 256  }
  0x12   :  { %95 = vsyncadd [#allocation4], 4294967040  ;;  %v28_v0 = vstv %s142_s0  ;;  %s99_s23 = smov [#allocation6]   ;;  %v26_v1 = vld [vmem:[#allocation3] sm:$0xff]  ;;  %v27_v2 = vld [vmem:[#allocation3 + $0x8] sm:$0xff] }
  0x13   :  { %s39_s24 = sshll.u32 %s99_s23, 4  ;;  %v29_v3 = vmul.f32 %v28_v0, %v26_v1  ;;  %v30_v4 = vmul.f32 %v28_v0, %v27_v2  ;;  %s40_s24 = int_to_ptr.vmem [resolvable:$true] %s39_s24 }
  0x14   :  { %s72_s25 = scalar_lea.vmem %s40_s24, 256  ;;  %p77_p9 = scmp.lt.s32.totalorder %s40_s24, %s40_s24 }
  0x15   :  { %31 = vst [vmem:[#allocation6] sm:$0xff] %v29_v3  ;;  %32 = vst [vmem:[#allocation6 + $0x8] sm:$0xff] %v30_v4  ;;  %p73_p8 = scmp.ne.s32.totalorder %s40_s24, %s72_s25  ;;  %p78_p10 = scmp.lt.s32.totalorder %s72_s25, %s72_s25 }
  0x17   :  { %p79_p11 = por %p78_p10, %p77_p9 }
  0x19   :  { %p80_p12 = pnand %p79_p11, %p73_p8 }
  0x1b   :  { %83 = shalt.err (!%p80_p12)
}
  0x1c   :  { %s84_s0 = scalar_lea.hbm %s144_s2, 256 }
  0x1d   :  { %p85_p13 = scmp.ne.s32.totalorder %s144_s2, %s84_s0  ;;  %p88_p0 = scmp.lt.u32.totalorder %s84_s0, %s144_s2 }
  0x1f   :  { %p90_p1 = pnand %p88_p0, %p85_p13 }
  0x21   :  { %93 = shalt.err (!%p90_p1)
}
  0x22   :  { %42 = dma.vmem_to_hbm [thread:$0]  %s40_s24, 256, %s144_s2, [#allocation5]  }
  0x23   :  { %96 = dma.done.wait [#allocation5], 256  }
  0x24   :  { %97 = vsyncadd [#allocation5], 4294967040 }
  0x25   :  { %46 = vsyncpa [#allocation4], 1 }
  0x26   :  { %47 = vsyncpa [#allocation5], 1 }

</bundles_post_ra>
